<compile_context>
chip_gen: v5e
topology: v5e:2x2
jax: 0.10.0
libtpu: 0.0.40
codegen_flags: <defaults>
</compile_context>

<pallas_src>
import jax
import jax.numpy as jnp
from jax import lax
from jax.experimental import pallas as pl
from jax.experimental.pallas import tpu as pltpu

LANE = 128
# ~4 MiB per input per pipeline buffer at f32 (=> ~16 MiB double-buffered for the
# two input streams), comfortably under v7x's 64 MiB physical VMEM.
_TILE_BYTES = 4 * 1024 * 1024


def _num_tensorcores():
    """1 on v5e/v6e, 2 on v7x; degrade gracefully to 1 if the query fails."""
    try:
        info = pltpu.get_tpu_info()
        for attr in ("num_cores", "core_count", "num_tensorcores", "tensorcores"):
            v = getattr(info, attr, None)
            if isinstance(v, int) and v > 0:
                return int(v)
    except Exception:
        pass
    try:
        v = getattr(jax.devices()[0], "num_cores", None)
        if isinstance(v, int) and v > 0:
            return int(v)
    except Exception:
        pass
    return 1


def _bce_elem_sum(p, t):
    """Plain-JAX summed BCE (used for the <128-element tail and the reference)."""
    p = p.astype(jnp.float32)
    t = t.astype(jnp.float32)
    log_p = jnp.maximum(jnp.log(p), -100.0)
    log_1mp = jnp.maximum(jnp.log1p(-p), -100.0)
    return -jnp.sum(log_1mp + t * (log_p - log_1mp))


def _make_bce_kernel(rows, tile_rows, inner, first_masked_block, needs_mask):
    folds = tile_rows // 8 if tile_rows % 8 == 0 else 0

    def _partial(val):
        # (tile_rows, LANE) -> (8, LANE) with pure VPU adds (no per-step XLU
        # reduce); fallback to a (1, LANE) row for tiny non-multiple-of-8 tiles.
        if folds:
            return jnp.sum(val.reshape(folds, 8, LANE), axis=0)
        return jnp.sum(val, axis=0, keepdims=True)

    def kernel(t_ref, p_ref, o_ref):
        k = pl.program_id(1)

        # The (1, 8, LANE) output block stays resident across the inner axis and
        # is used directly as the accumulator: no scratch stream, so a compute
        # vreg costs 2 vector loads (t, p) instead of 3 loads + 1 store.
        @pl.when(k == 0)
        def _init():
            o_ref[...] = jnp.zeros_like(o_ref)

        # Native-dtype HBM tiles, upcast in-vreg (cheap on the VPU).
        t = t_ref[...].astype(jnp.float32)
        p = p_ref[...].astype(jnp.float32)
        # torch.nn.BCELoss clamps its log terms at -100.
        log_p = jnp.maximum(jnp.log(p), -100.0)
        log_1mp = jnp.maximum(jnp.log1p(-p), -100.0)
        # -(t*log_p + (1-t)*log_1mp) == -(log_1mp + t*(log_p - log_1mp))
        val = -(log_1mp + t * (log_p - log_1mp))

        def _acc(v):
            if folds:
                o_ref[0] += _partial(v)
            else:
                o_ref[0, 0:1, :] += _partial(v)

        if needs_mask:
            blk = pl.program_id(0) * inner + k

            @pl.when(blk < first_masked_block)
            def _hot():  # common path: no iota / compare / select work
                _acc(val)

            @pl.when(blk >= first_masked_block)
            def _tail():
                # Rows past the logical end of the array (partial last block or
                # over-assigned clamped steps) hold unspecified data that may
                # have produced NaN/Inf in `val`; mask AFTER computing val so
                # where() discards them.  remaining <= 0 zeroes a whole block.
                remaining = rows - blk * tile_rows
                row_in_blk = lax.broadcasted_iota(jnp.int32, (tile_rows, LANE), 0)
                _acc(jnp.where(row_in_blk < remaining, val, 0.0))
        else:
            _acc(val)

    return kernel


def bce_sum(x_rec, x):
    """nn.BCELoss(reduction='sum')(x_rec, x) as a Pallas TPU streaming reduction."""
    assert x_rec.shape == x.shape
    t_flat = x.reshape(-1)
    p_flat = x_rec.reshape(-1)
    n = t_flat.size

    rows = n // LANE
    main = rows * LANE

    total = jnp.float32(0.0)
    if main < n:
        # <128-element tail: plain JAX instead of padding/copying the big tensors.
        total = total + _bce_elem_sum(p_flat[main:], t_flat[main:])
    if rows == 0:
        return total
    if main < n:
        # TODO(synk): this prefix slice may materialise a copy for misaligned n;
        # not hit for whole-image NCHW tensors (n % 128 == 0 -> reshape only).
        t_flat = t_flat[:main]
        p_flat = p_flat[:main]

    t2 = t_flat.reshape(rows, LANE)   # reshape only: no pad, no dtype cast
    p2 = p_flat.reshape(rows, LANE)

    itemsize = max(t2.dtype.itemsize, p2.dtype.itemsize)
    max_tile_rows = max(8, (_TILE_BYTES // (LANE * itemsize)) // 8 * 8)

    if rows < 8:
        tile_rows = rows                       # full-array block (tiny input)
    elif rows % 8 == 0 and rows <= max_tile_rows:
        tile_rows = rows
    else:
        tile_rows = min(max_tile_rows, (rows // 8) * 8)

    nblocks = pl.cdiv(rows, tile_rows)

    # 1 slice on v5e/v6e (single TensorCore: an outer "parallel" axis would only
    # add overhead); 2 on v7x so the grid shards across both TensorCores.
    num_slices = min(_num_tensorcores(), nblocks)
    inner = pl.cdiv(nblocks, num_slices)
    num_slices = pl.cdiv(nblocks, inner)       # drop fully-redundant trailing slices

    total_steps = num_slices * inner
    last_block_partial = (rows % tile_rows) != 0
    needs_mask = last_block_partial or (total_steps > nblocks)
    first_masked_block = (nblocks - 1) if last_block_partial else nblocks

    if total_steps == nblocks:
        def in_map(s, k):
            return (s * inner + k, 0)
    else:
        # Over-assigned trailing steps of the last slice re-map to the last real
        # block (masked to zero in-kernel); since the block index repeats across
        # consecutive steps, the pipeline does not re-issue the DMA.
        def in_map(s, k):
            return (jnp.minimum(s * inner + k, nblocks - 1), 0)

    partials = pl.pallas_call(
        _make_bce_kernel(rows, tile_rows, inner, first_masked_block, needs_mask),
        out_shape=jax.ShapeDtypeStruct((num_slices, 8, LANE), jnp.float32),
        grid=(num_slices, inner),
        in_specs=[
            pl.BlockSpec((tile_rows, LANE), in_map),
            pl.BlockSpec((tile_rows, LANE), in_map),
        ],
        out_specs=pl.BlockSpec((1, 8, LANE), lambda s, k: (s, 0, 0)),
        compiler_params=pltpu.CompilerParams(
            dimension_semantics=("parallel", "arbitrary"),
            # ~16 MiB of double-buffered input tiles + headroom; above v5e's
            # 16 MiB scoped default, well below v7x's 64 MiB physical VMEM.
            vmem_limit_bytes=32 * 1024 * 1024,
        ),
        cost_estimate=pl.CostEstimate(
            flops=6 * main,
            transcendentals=2 * main,
            bytes_accessed=main * (t2.dtype.itemsize + p2.dtype.itemsize)
            + num_slices * 8 * LANE * 4,
        ),
    )(t2, p2)

    return total + jnp.sum(partials)


def normal_std_kl_sum(mu, sigma):
    """sum KL( Normal(mu, sigma) || Normal(0, 1) ), matching torch kl_divergence."""
    mu = mu.astype(jnp.float32)
    sigma = sigma.astype(jnp.float32)
    return jnp.sum(-jnp.log(sigma) + 0.5 * (sigma * sigma + mu * mu - 1.0))


def kl_loss(mu, sigma, z, x, x_rec, beta, prior="normal"):
    """JAX/Pallas equivalent of klLoss_.forward(latent_dist, z, x, x_rec, beta)
    with latent_dist = Normal(mu, sigma) and prior='normal'.

    (z only feeds .get_device() in the PyTorch code; model_precision / z_dim do
    not enter this forward pass.)
    """
    recon = bce_sum(x_rec, x)                    # Pallas: heavy HBM-bound sum
    if prior == "normal":
        kl = normal_std_kl_sum(mu, sigma)        # tiny (B, z_dim) -> JAX glue
    else:
        # TODO(synk): beta / dirichlet / laplace / low-rank-MVN prior branches
        # of klLoss_ are not translated (different closed-form KLs).
        raise NotImplementedError(f"prior={prior!r} not implemented")
    return recon + beta * kl


def _reference(mu, sigma, x, x_rec, beta):
    """Pure-JAX reference mirroring the PyTorch forward (prior='normal')."""
    return _bce_elem_sum(x_rec, x) + beta * normal_std_kl_sum(mu, sigma)


if __name__ == "__main__":
    key = jax.random.PRNGKey(0)
    kx, kr, km, ks, kz = jax.random.split(key, 5)

    B, C, H, W = 2, 4, 16, 16
    z_dim = 32
    beta = 0.5

    # BCE targets / reconstructions live in (0, 1).
    x = jax.nn.sigmoid(jax.random.normal(kx, (B, C, H, W), dtype=jnp.float32))
    x_rec = jax.nn.sigmoid(jax.random.normal(kr, (B, C, H, W), dtype=jnp.float32))

    # latent_dist = Normal(mu, sigma); z is a reparameterised sample (unused by the loss).
    mu = jax.random.normal(km, (B, z_dim), dtype=jnp.float32)
    sigma = jnp.exp(0.1 * jax.random.normal(ks, (B, z_dim), dtype=jnp.float32))
    z = mu + sigma * jax.random.normal(kz, (B, z_dim), dtype=jnp.float32)

    loss_fn = jax.jit(kl_loss, static_argnames=("prior",))
    loss = jax.block_until_ready(loss_fn(mu, sigma, z, x, x_rec, beta))

    ref = _reference(mu, sigma, x, x_rec, beta)
    assert jnp.allclose(loss, ref, rtol=1e-4, atol=1e-3), (loss, ref)

    print("KERNEL_OK")
</pallas_src>

<mosaic_0001>
module attributes {stable_mosaic.version = 11 : i64} {
  func.func @kernel(%arg0: i32, %arg1: i32, %arg2: memref<16x128xf32, #tpu.memory_space<vmem>>, %arg3: memref<16x128xf32, #tpu.memory_space<vmem>>, %arg4: memref<1x8x128xf32, #tpu.memory_space<vmem>>) attributes {dimension_semantics = [#tpu.dimension_semantics<parallel>, #tpu.dimension_semantics<arbitrary>], iteration_bounds = array<i64: 1, 1>, scalar_prefetch = 0 : i64, scratch_operands = 0 : i64, tpu.core_type = #tpu.core_type<tc>, window_params = [{transform_indices = @transform_0, window_bounds = array<i64: 16, 128>}, {transform_indices = @transform_1, window_bounds = array<i64: 16, 128>}, {transform_indices = @transform_2, window_bounds = array<i64: 1, 8, 128>}]} {
    %c0_i32 = arith.constant 0 : i32
    %0 = arith.cmpi eq, %arg1, %c0_i32 : i32
    %1 = arith.extui %0 : i1 to i32
    %c0_i32_0 = arith.constant 0 : i32
    %2 = arith.cmpi ne, %1, %c0_i32_0 : i32
    scf.if %2 {
      %cst_14 = arith.constant 0.000000e+00 : f32
      %26 = vector.broadcast %cst_14 : f32 to vector<1x8x128xf32>
      %c0_15 = arith.constant 0 : index
      %c0_16 = arith.constant 0 : index
      %c0_17 = arith.constant 0 : index
      %27 = vector.load %arg4[%c0_15, %c0_16, %c0_17] : memref<1x8x128xf32, #tpu.memory_space<vmem>>, vector<1x8x128xf32>
      tpu.vector_store %arg4[%c0_15, %c0_16, %c0_17], %26 {strides = array<i32>} : memref<1x8x128xf32, #tpu.memory_space<vmem>>, vector<1x8x128xf32>,
    } else {
    }
    %c0 = arith.constant 0 : index
    %c0_1 = arith.constant 0 : index
    %3 = vector.load %arg2[%c0, %c0_1] : memref<16x128xf32, #tpu.memory_space<vmem>>, vector<16x128xf32>
    %c0_2 = arith.constant 0 : index
    %c0_3 = arith.constant 0 : index
    %4 = vector.load %arg3[%c0_2, %c0_3] : memref<16x128xf32, #tpu.memory_space<vmem>>, vector<16x128xf32>
    %5 = math.log %4 : vector<16x128xf32>
    %cst = arith.constant -1.000000e+02 : f32
    %6 = vector.broadcast %cst : f32 to vector<16x128xf32>
    %7 = arith.maximumf %5, %6 : vector<16x128xf32>
    %cst_4 = arith.constant 0.000000e+00 : f32
    %8 = vector.broadcast %cst_4 : f32 to vector<16x128xf32>
    %9 = arith.subf %8, %4 : vector<16x128xf32>
    %10 = math.log1p %9 : vector<16x128xf32>
    %cst_5 = arith.constant -1.000000e+02 : f32
    %11 = vector.broadcast %cst_5 : f32 to vector<16x128xf32>
    %12 = arith.maximumf %10, %11 : vector<16x128xf32>
    %13 = arith.subf %7, %12 : vector<16x128xf32>
    %14 = arith.mulf %3, %13 : vector<16x128xf32>
    %15 = arith.addf %12, %14 : vector<16x128xf32>
    %cst_6 = arith.constant 0.000000e+00 : f32
    %16 = vector.broadcast %cst_6 : f32 to vector<16x128xf32>
    %17 = arith.subf %16, %15 : vector<16x128xf32>
    %c0_7 = arith.constant 0 : index
    %c0_8 = arith.constant 0 : index
    %c0_9 = arith.constant 0 : index
    %18 = vector.load %arg4[%c0_7, %c0_8, %c0_9] : memref<1x8x128xf32, #tpu.memory_space<vmem>>, vector<1x8x128xf32>
    %19 = vector.shape_cast %18 : vector<1x8x128xf32> to vector<8x128xf32>
    %20 = vector.shape_cast %17 : vector<16x128xf32> to vector<2x8x128xf32>
    %cst_10 = arith.constant dense<0.000000e+00> : vector<8x128xf32>
    %21 = vector.multi_reduction <add>, %20, %cst_10 [0] : vector<2x8x128xf32> to vector<8x128xf32>
    %22 = arith.addf %19, %21 : vector<8x128xf32>
    %c0_11 = arith.constant 0 : index
    %c0_12 = arith.constant 0 : index
    %c0_13 = arith.constant 0 : index
    %23 = vector.load %arg4[%c0_11, %c0_12, %c0_13] : memref<1x8x128xf32, #tpu.memory_space<vmem>>, vector<1x8x128xf32>
    %24 = vector.shape_cast %23 : vector<1x8x128xf32> to vector<8x128xf32>
    %25 = vector.shape_cast %22 : vector<8x128xf32> to vector<1x8x128xf32>
    tpu.vector_store %arg4[%c0_11, %c0_12, %c0_13], %25 {strides = array<i32>} : memref<1x8x128xf32, #tpu.memory_space<vmem>>, vector<1x8x128xf32>,
    return
  }
  func.func @transform_0(%arg0: i32, %arg1: i32) -> (i32, i32) {
    %c1_i32 = arith.constant 1 : i32
    %0 = arith.muli %arg0, %c1_i32 : i32
    %1 = arith.addi %0, %arg1 : i32
    %c0_i32 = arith.constant 0 : i32
    %c0_i32_0 = arith.constant 0 : i32
    return %1, %c0_i32 : i32, i32
  }
  func.func @transform_1(%arg0: i32, %arg1: i32) -> (i32, i32) {
    %c1_i32 = arith.constant 1 : i32
    %0 = arith.muli %arg0, %c1_i32 : i32
    %1 = arith.addi %0, %arg1 : i32
    %c0_i32 = arith.constant 0 : i32
    %c0_i32_0 = arith.constant 0 : i32
    return %1, %c0_i32 : i32, i32
  }
  func.func @transform_2(%arg0: i32, %arg1: i32) -> (i32, i32, i32) {
    %c0_i32 = arith.constant 0 : i32
    %c0_i32_0 = arith.constant 0 : i32
    %c0_i32_1 = arith.constant 0 : i32
    return %arg0, %c0_i32, %c0_i32_0 : i32, i32, i32
  }
}

</mosaic_0001>

<bundles_post_ra>
// kernel: kl_loss.1
= control target key start
LH: loop header
LB: loop body
LE: loop exit
PB: predicated region body
PF: predicated region fallthrough
CT: control target
= control target key end

     0   :  { %s159_s1 = inlined_call_operand.vmem [shape: f32[16,128], index: 1, kind: input, shape index: {}]   ;;  %s160_s0 = inlined_call_operand.vmem [shape: f32[16,128], index: 0, kind: input, shape index: {}]   ;;  %s161_s2 = inlined_call_operand.vmem [shape: f32[1,8,128], index: 2, kind: output, shape index: {}]  }
   0x1   :  { %v62_v0 = vld [vmem:[%s159_s1] sm:$0xff]  ;;  %v63_v1 = vld [vmem:[%s159_s1 + $0x8] sm:$0xff] }
   0x2   :  { %121 = vlog2.f32 %v62_v0  ;;  %v70_v2 = vsub.f32 0.0, %v62_v0  ;;  %v71_v3 = vsub.f32 0.0, %v63_v1  ;;  %v60_v27 = vld [vmem:[%s160_s0] sm:$0xff]  ;;  %v61_v29 = vld [vmem:[%s160_s0 + $0x8] sm:$0xff] }
   0x3   :  { %123 = vlog2.f32 %v63_v1 }
   0x4   :  { %v72_v4 = vadd.f32 1.0, %v70_v2  ;;  %v75_v5 = vmul.f32 -0.5, %v70_v2  ;;  %v81_v6 = vadd.f32 1.0, %v71_v3  ;;  %v84_v7 = vmul.f32 -0.5, %v71_v3 }
   0x5   :  { %v78_v10 = vand.u32 2147483647, %v70_v2  ;;  %v87_v13 = vand.u32 2147483647, %v71_v3 }
   0x6   :  { %125 = vlog2.f32 %v72_v4  ;;  %v76_v8 = vadd.f32 1.0, %v75_v5  ;;  %v85_v11 = vadd.f32 1.0, %v84_v7 }
   0x7   :  { %127 = vlog2.f32 %v81_v6  ;;  %vm79_vm0 = vcmp.lt.f32.partialorder %v78_v10, 0.0004427343  ;;  %vm88_vm1 = vcmp.lt.f32.partialorder %v87_v13, 0.0004427343 }
   0x8   :  { %v122_v9 = vpop.eup %121  ;;  %v77_v16 = vmul.f32 %v76_v8, %v70_v2  ;;  %v86_v18 = vmul.f32 %v85_v11, %v71_v3 }
   0x9   :  { %v124_v12 = vpop.eup %123  ;;  %v65_v14 = vmul.f32 0.6931472, %v122_v9 }
   0xa   :  { %v67_v15 = vmul.f32 0.6931472, %v124_v12 }
   0xb   :  { %v68_v21 = vmax.f32 %v65_v14, -100.0 }
   0xc   :  { %v126_v17 = vpop.eup %125  ;;  %v69_v23 = vmax.f32 %v67_v15, -100.0 }
   0xd   :  { %v128_v19 = vpop.eup %127  ;;  %v74_v20 = vmul.f32 0.6931472, %v126_v17 }
   0xe   :  { %v83_v22 = vmul.f32 0.6931472, %v128_v19 }
   0xf   :  { %v80_v24 = vsel %vm79_vm0, %v77_v16, %v74_v20 }
  0x10   :  { %v89_v25 = vsel %vm88_vm1, %v86_v18, %v83_v22  ;;  %v90_v26 = vmax.f32 %v80_v24, -100.0 }
  0x11   :  { %v91_v28 = vmax.f32 %v89_v25, -100.0 }
  0x12   :  { %v92_v30 = vsub.f32 %v68_v21, %v90_v26 }
  0x13   :  { %v93_v31 = vsub.f32 %v69_v23, %v91_v28 }
  0x14   :  { %v94_v32 = vmul.f32 %v92_v30, %v60_v27 }
  0x15   :  { %v95_v33 = vmul.f32 %v93_v31, %v61_v29 }
  0x16   :  { %v96_v34 = vadd.f32 %v94_v32, %v90_v26 }
  0x17   :  { %v97_v35 = vadd.f32 %v95_v33, %v91_v28 }
  0x18   :  { %v98_v36 = vsub.f32 0.0, %v96_v34 }
  0x19   :  { %v99_v37 = vsub.f32 0.0, %v97_v35 }
  0x1b   :  { %v101_v38 = vadd.f32 %v99_v37, %v98_v36 }
  0x1d   :  { %103 = vst [vmem:[%s161_s2] sm:$0xff] %v101_v38 }

</bundles_post_ra>
